<compile_context>
chip_gen: v7x
topology: tpu7x:2x2x1
jax: 0.10.0
libtpu: 0.0.40
codegen_flags: <defaults>
</compile_context>

<pallas_src>
import jax
import jax.numpy as jnp
from jax import lax
from jax.experimental import pallas as pl
from jax.experimental.pallas import tpu as pltpu


def _round_up(x, m):
    return (x + m - 1) // m * m


def _puremf_kernel(users_ref, items_ref,        # scalar-prefetch index vectors (SMEM)
                   emb_user_hbm, emb_item_hbm,  # full embedding tables, left in HBM
                   o_ref,                       # (1, 1, TB) lane-dense output tile
                   u_buf, i_buf, sems):         # VMEM gather scratch + DMA semaphores
    tb, _ = u_buf.shape
    base = pl.program_id(0) * tb

    # --- Fused gather: one row-sized DMA per embedding row, all in flight.
    def issue(r, carry):
        u_idx = users_ref[base + r]
        i_idx = items_ref[base + r]
        pltpu.make_async_copy(emb_user_hbm.at[u_idx], u_buf.at[r], sems.at[0]).start()
        pltpu.make_async_copy(emb_item_hbm.at[i_idx], i_buf.at[r], sems.at[1]).start()
        return carry

    lax.fori_loop(0, tb, issue, 0)

    # Drain: all copies are identical row-sized transfers, so TB waits per
    # semaphore balance the TB signals (the refs below only provide the size).
    def drain(r, carry):
        pltpu.make_async_copy(emb_user_hbm.at[0], u_buf.at[r], sems.at[0]).wait()
        pltpu.make_async_copy(emb_item_hbm.at[0], i_buf.at[r], sems.at[1]).wait()
        return carry

    lax.fori_loop(0, tb, drain, 0)

    # --- Compute: VPU multiply, XLU latent-dim reduction, EUP sigmoid.
    prod = u_buf[...].astype(jnp.float32) * i_buf[...].astype(jnp.float32)  # (TB, D)
    scores = jnp.sum(prod, axis=-1)                                         # (TB,)
    o_ref[...] = jax.nn.sigmoid(scores).reshape(1, 1, tb)                   # lane-dense


def puremf_forward(emb_user, emb_item, users, items, *, tb=None):
    """Pallas implementation of PureMF.forward.

    emb_user: (num_users, D) float32 embedding table
    emb_item: (num_items, D) float32 embedding table
    users, items: (B,) integer indices
    returns: (B,) float32 sigmoid(<user_emb, item_emb>)
    """
    users = users.astype(jnp.int32)
    items = items.astype(jnp.int32)
    (B,) = users.shape
    D = emb_user.shape[1]
    dt = emb_user.dtype

    if tb is None:
        # Rows per grid step: multiple of 128 (lane-dense output), capped so
        # the two gather buffers stay <= ~4 MiB of VMEM (safe headroom on
        # v5e's 16 MiB scoped default and v7x's 64 MiB physical VMEM).
        budget_rows = (4 * 1024 * 1024) // (2 * D * 4)
        tb = max(128, min(2048, (budget_rows // 128) * 128))
        tb = min(tb, _round_up(B, 128))      # don't over-pad tiny batches
    assert tb % 128 == 0

    B_pad = _round_up(B, tb)
    nb = B_pad // tb
    if B_pad != B:
        pad = B_pad - B
        # Row 0 is always a valid index; padded scores are discarded below.
        users = jnp.concatenate([users, jnp.zeros((pad,), jnp.int32)])
        items = jnp.concatenate([items, jnp.zeros((pad,), jnp.int32)])

    out = pl.pallas_call(
        _puremf_kernel,
        out_shape=jax.ShapeDtypeStruct((nb, 1, tb), jnp.float32),
        grid_spec=pltpu.PrefetchScalarGridSpec(
            num_scalar_prefetch=2,                    # users, items -> SMEM
            grid=(nb,),
            in_specs=[
                pl.BlockSpec(memory_space=pl.ANY),    # user table stays in HBM
                pl.BlockSpec(memory_space=pl.ANY),    # item table stays in HBM
            ],
            out_specs=pl.BlockSpec((1, 1, tb), lambda b, u_idx, i_idx: (b, 0, 0)),
            scratch_shapes=[
                pltpu.VMEM((tb, D), dt),              # gathered user rows
                pltpu.VMEM((tb, D), dt),              # gathered item rows
                pltpu.SemaphoreType.DMA((2,)),        # user / item gather sems
            ],
        ),
        compiler_params=pltpu.CompilerParams(
            dimension_semantics=("parallel",),        # megacore-shardable on v7x
        ),
        cost_estimate=pl.CostEstimate(
            flops=2 * B_pad * D,
            transcendentals=B_pad,
            bytes_accessed=2 * B_pad * D * dt.itemsize + 2 * B_pad * 4 + B_pad * 4,
        ),
    )(users, items, emb_user, emb_item)

    return out.reshape(B_pad)[:B]


if __name__ == "__main__":
    # Deterministic N(0,1) init, as in PureMF.__init_weight.
    num_users, num_items, latent_dim = 64, 96, 32
    batch = 8

    key = jax.random.PRNGKey(0)
    k_u, k_i, k_uidx, k_iidx = jax.random.split(key, 4)

    embedding_user = jax.random.normal(k_u, (num_users, latent_dim), dtype=jnp.float32)
    embedding_item = jax.random.normal(k_i, (num_items, latent_dim), dtype=jnp.float32)

    users = jax.random.randint(k_uidx, (batch,), 0, num_users, dtype=jnp.int32)
    items = jax.random.randint(k_iidx, (batch,), 0, num_items, dtype=jnp.int32)

    scores = puremf_forward(embedding_user, embedding_item, users, items)
    scores = jax.block_until_ready(scores)

    # Reference check in plain JAX.
    ref = jax.nn.sigmoid(
        jnp.sum(embedding_user[users] * embedding_item[items], axis=1)
    )
    assert scores.shape == (batch,)
    assert jnp.allclose(scores, ref, atol=1e-5, rtol=1e-5), (scores, ref)

    print("KERNEL_OK")
</pallas_src>

<mosaic_0001>
module attributes {stable_mosaic.version = 11 : i64} {
  func.func @_puremf_kernel(%arg0: i32, %arg1: memref<128xi32, #tpu.memory_space<smem>>, %arg2: memref<128xi32, #tpu.memory_space<smem>>, %arg3: memref<64x32xf32, #tpu.memory_space<any>>, %arg4: memref<96x32xf32, #tpu.memory_space<any>>, %arg5: memref<1x1x128xf32, #tpu.memory_space<vmem>>, %arg6: memref<128x32xf32, #tpu.memory_space<vmem>>, %arg7: memref<128x32xf32, #tpu.memory_space<vmem>>, %arg8: memref<2x!tpu.dma_semaphore, #tpu.memory_space<semaphore_mem>>) attributes {dimension_semantics = [#tpu.dimension_semantics<parallel>], iteration_bounds = array<i64: 1>, scalar_prefetch = 2 : i64, scratch_operands = 3 : i64, tpu.core_type = #tpu.core_type<tc>, window_params = [{}, {}, {transform_indices = @transform_2, window_bounds = array<i64: 1, 1, 128>}]} {
    %c128_i32 = arith.constant 128 : i32
    %0 = arith.muli %arg0, %c128_i32 : i32
    %c0_i32 = arith.constant 0 : i32
    %c128_i32_0 = arith.constant 128 : i32
    %1 = arith.addi %c0_i32, %c128_i32_0 : i32
    %c1_i32 = arith.constant 1 : i32
    scf.for %arg9 = %c0_i32 to %1 step %c1_i32  : i32 {
      %14 = arith.addi %0, %arg9 : i32
      %15 = arith.index_cast %14 : i32 to index
      %16 = memref.load %arg1[%15] : memref<128xi32, #tpu.memory_space<smem>>
      %17 = arith.addi %0, %arg9 : i32
      %18 = arith.index_cast %17 : i32 to index
      %19 = memref.load %arg2[%18] : memref<128xi32, #tpu.memory_space<smem>>
      %c0_i32_13 = arith.constant 0 : i32
      %c0_i32_14 = arith.constant 0 : i32
      %20 = tpu.memref_slice %arg3[%16, %c0_i32_14] : memref<64x32xf32, #tpu.memory_space<any>> -> memref<1x32xf32, #tpu.memory_space<any>>
      %21 = tpu.memref_squeeze %20 : memref<1x32xf32, #tpu.memory_space<any>> -> memref<32xf32, #tpu.memory_space<any>>
      %c0_i32_15 = arith.constant 0 : i32
      %22 = tpu.memref_slice %arg6[%arg9, %c0_i32_15] : memref<128x32xf32, #tpu.memory_space<vmem>> -> memref<1x32xf32, #tpu.memory_space<vmem>>
      %23 = tpu.memref_squeeze %22 : memref<1x32xf32, #tpu.memory_space<vmem>> -> memref<32xf32, #tpu.memory_space<vmem>>
      %24 = tpu.memref_slice %arg8[%c0_i32_13] : memref<2x!tpu.dma_semaphore, #tpu.memory_space<semaphore_mem>> -> memref<1x!tpu.dma_semaphore, #tpu.memory_space<semaphore_mem>>
      %25 = tpu.memref_squeeze %24 : memref<1x!tpu.dma_semaphore, #tpu.memory_space<semaphore_mem>> -> memref<!tpu.dma_semaphore, #tpu.memory_space<semaphore_mem>>
      tpu.enqueue_dma source(%21 : memref<32xf32, #tpu.memory_space<any>>) target(%23 : memref<32xf32, #tpu.memory_space<vmem>>) target_semaphore(%25 : memref<!tpu.dma_semaphore, #tpu.memory_space<semaphore_mem>>)
      %c1_i32_16 = arith.constant 1 : i32
      %c0_i32_17 = arith.constant 0 : i32
      %26 = tpu.memref_slice %arg4[%19, %c0_i32_17] : memref<96x32xf32, #tpu.memory_space<any>> -> memref<1x32xf32, #tpu.memory_space<any>>
      %27 = tpu.memref_squeeze %26 : memref<1x32xf32, #tpu.memory_space<any>> -> memref<32xf32, #tpu.memory_space<any>>
      %c0_i32_18 = arith.constant 0 : i32
      %28 = tpu.memref_slice %arg7[%arg9, %c0_i32_18] : memref<128x32xf32, #tpu.memory_space<vmem>> -> memref<1x32xf32, #tpu.memory_space<vmem>>
      %29 = tpu.memref_squeeze %28 : memref<1x32xf32, #tpu.memory_space<vmem>> -> memref<32xf32, #tpu.memory_space<vmem>>
      %30 = tpu.memref_slice %arg8[%c1_i32_16] : memref<2x!tpu.dma_semaphore, #tpu.memory_space<semaphore_mem>> -> memref<1x!tpu.dma_semaphore, #tpu.memory_space<semaphore_mem>>
      %31 = tpu.memref_squeeze %30 : memref<1x!tpu.dma_semaphore, #tpu.memory_space<semaphore_mem>> -> memref<!tpu.dma_semaphore, #tpu.memory_space<semaphore_mem>>
      tpu.enqueue_dma source(%27 : memref<32xf32, #tpu.memory_space<any>>) target(%29 : memref<32xf32, #tpu.memory_space<vmem>>) target_semaphore(%31 : memref<!tpu.dma_semaphore, #tpu.memory_space<semaphore_mem>>)
    }
    %c128_i32_1 = arith.constant 128 : i32
    %c0_i32_2 = arith.constant 0 : i32
    %c128_i32_3 = arith.constant 128 : i32
    %2 = arith.addi %c0_i32_2, %c128_i32_3 : i32
    %c1_i32_4 = arith.constant 1 : i32
    scf.for %arg9 = %c0_i32_2 to %2 step %c1_i32_4  : i32 {
      %c0_i32_13 = arith.constant 0 : i32
      %c0_i32_14 = arith.constant 0 : i32
      %c0_i32_15 = arith.constant 0 : i32
      %14 = tpu.memref_slice %arg3[%c0_i32_13, %c0_i32_15] : memref<64x32xf32, #tpu.memory_space<any>> -> memref<1x32xf32, #tpu.memory_space<any>>
      %15 = tpu.memref_squeeze %14 : memref<1x32xf32, #tpu.memory_space<any>> -> memref<32xf32, #tpu.memory_space<any>>
      %c0_i32_16 = arith.constant 0 : i32
      %16 = tpu.memref_slice %arg6[%arg9, %c0_i32_16] : memref<128x32xf32, #tpu.memory_space<vmem>> -> memref<1x32xf32, #tpu.memory_space<vmem>>
      %17 = tpu.memref_squeeze %16 : memref<1x32xf32, #tpu.memory_space<vmem>> -> memref<32xf32, #tpu.memory_space<vmem>>
      %18 = tpu.memref_slice %arg8[%c0_i32_14] : memref<2x!tpu.dma_semaphore, #tpu.memory_space<semaphore_mem>> -> memref<1x!tpu.dma_semaphore, #tpu.memory_space<semaphore_mem>>
      %19 = tpu.memref_squeeze %18 : memref<1x!tpu.dma_semaphore, #tpu.memory_space<semaphore_mem>> -> memref<!tpu.dma_semaphore, #tpu.memory_space<semaphore_mem>>
      tpu.wait_dma2 semaphore(%19 : memref<!tpu.dma_semaphore, #tpu.memory_space<semaphore_mem>>) src(%15 : memref<32xf32, #tpu.memory_space<any>>) dst(%17 : memref<32xf32, #tpu.memory_space<vmem>>)
      %c0_i32_17 = arith.constant 0 : i32
      %c1_i32_18 = arith.constant 1 : i32
      %c0_i32_19 = arith.constant 0 : i32
      %20 = tpu.memref_slice %arg4[%c0_i32_17, %c0_i32_19] : memref<96x32xf32, #tpu.memory_space<any>> -> memref<1x32xf32, #tpu.memory_space<any>>
      %21 = tpu.memref_squeeze %20 : memref<1x32xf32, #tpu.memory_space<any>> -> memref<32xf32, #tpu.memory_space<any>>
      %c0_i32_20 = arith.constant 0 : i32
      %22 = tpu.memref_slice %arg7[%arg9, %c0_i32_20] : memref<128x32xf32, #tpu.memory_space<vmem>> -> memref<1x32xf32, #tpu.memory_space<vmem>>
      %23 = tpu.memref_squeeze %22 : memref<1x32xf32, #tpu.memory_space<vmem>> -> memref<32xf32, #tpu.memory_space<vmem>>
      %24 = tpu.memref_slice %arg8[%c1_i32_18] : memref<2x!tpu.dma_semaphore, #tpu.memory_space<semaphore_mem>> -> memref<1x!tpu.dma_semaphore, #tpu.memory_space<semaphore_mem>>
      %25 = tpu.memref_squeeze %24 : memref<1x!tpu.dma_semaphore, #tpu.memory_space<semaphore_mem>> -> memref<!tpu.dma_semaphore, #tpu.memory_space<semaphore_mem>>
      tpu.wait_dma2 semaphore(%25 : memref<!tpu.dma_semaphore, #tpu.memory_space<semaphore_mem>>) src(%21 : memref<32xf32, #tpu.memory_space<any>>) dst(%23 : memref<32xf32, #tpu.memory_space<vmem>>)
    }
    %c128_i32_5 = arith.constant 128 : i32
    %c0 = arith.constant 0 : index
    %c0_6 = arith.constant 0 : index
    %3 = vector.load %arg6[%c0, %c0_6] : memref<128x32xf32, #tpu.memory_space<vmem>>, vector<128x32xf32>
    %c0_7 = arith.constant 0 : index
    %c0_8 = arith.constant 0 : index
    %4 = vector.load %arg7[%c0_7, %c0_8] : memref<128x32xf32, #tpu.memory_space<vmem>>, vector<128x32xf32>
    %5 = arith.mulf %3, %4 : vector<128x32xf32>
    %cst = arith.constant dense<0.000000e+00> : vector<128xf32>
    %6 = vector.multi_reduction <add>, %5, %cst [1] : vector<128x32xf32> to vector<128xf32>
    %7 = arith.negf %6 : vector<128xf32>
    %8 = math.exp %7 : vector<128xf32>
    %cst_9 = arith.constant 1.000000e+00 : f32
    %9 = vector.broadcast %cst_9 : f32 to vector<128xf32>
    %10 = arith.addf %9, %8 : vector<128xf32>
    %11 = arith.divf %9, %10 : vector<128xf32>
    %12 = vector.shape_cast %11 : vector<128xf32> to vector<1x1x128xf32>
    %c0_10 = arith.constant 0 : index
    %c0_11 = arith.constant 0 : index
    %c0_12 = arith.constant 0 : index
    %13 = vector.load %arg5[%c0_10, %c0_11, %c0_12] : memref<1x1x128xf32, #tpu.memory_space<vmem>>, vector<1x1x128xf32>
    tpu.vector_store %arg5[%c0_10, %c0_11, %c0_12], %12 {strides = array<i32>} : memref<1x1x128xf32, #tpu.memory_space<vmem>>, vector<1x1x128xf32>,
    return
  }
  func.func @transform_2(%arg0: i32, %arg1: memref<128xi32, #tpu.memory_space<smem>>, %arg2: memref<128xi32, #tpu.memory_space<smem>>) -> (i32, i32, i32) {
    %c0_i32 = arith.constant 0 : i32
    %c0_i32_0 = arith.constant 0 : i32
    %c0_i32_1 = arith.constant 0 : i32
    return %arg0, %c0_i32, %c0_i32_0 : i32, i32, i32
  }
}

</mosaic_0001>

<bundles_post_ra>
// kernel: tpu_custom_call.1
= control target key start
LH: loop header
LB: loop body
LE: loop exit
PB: predicated region body
PF: predicated region fallthrough
CT: control target
= control target key end

     0   :  { %s797_s0 = inlined_call_operand.vmem [shape: s32[128], index: 0, kind: input, shape index: {}]   ;;  %s798_s2 = inlined_call_operand.vmem [shape: f32[64,32], index: 2, kind: input, shape index: {}]   ;;  %s799_s3 = inlined_call_operand.vmem [shape: f32[96,32], index: 3, kind: input, shape index: {}]   ;;  %s800_s4 = inlined_call_operand.hbm [shape: f32[1,1,128], index: 4, kind: output, shape index: {}]   ;;  %s801_s1 = inlined_call_operand.vmem [shape: s32[128], index: 1, kind: input, shape index: {}]  }
   0x1   :  { %s9_s17 = sshll.u32 %s797_s0, 4  ;;  %s13_s20 = sshll.u32 %s801_s1, 4  ;;  %s10_s17 = int_to_ptr.vmem [resolvable:$true] %s9_s17  ;;  %s14_s20 = int_to_ptr.vmem [resolvable:$true] %s13_s20 }
   0x2   :  { %s618_s21 = scalar_lea.vmem %s10_s17, 16  ;;  %p623_p1 = scmp.lt.s32.totalorder %s10_s17, %s10_s17 }
   0x3   :  { %p619_p0 = scmp.ne.s32.totalorder %s10_s17, %s618_s21  ;;  %p624_p2 = scmp.lt.s32.totalorder %s618_s21, %s618_s21 }
   0x5   :  { %p625_p3 = por %p624_p2, %p623_p1 }
   0x7   :  { %p626_p4 = pnand %p625_p3, %p619_p0 }
   0x9   :  { %629 = shalt.err (!%p626_p4)  }
   0xa   :  { %s688_s22 = smov [#allocation6]   ;;  %s630_s23 = scalar_lea.vmem %s14_s20, 16 }
   0xb   :  { %12 = dma.vmem_to_smem %s10_s17, 16, %s688_s22, [#allocation5] }
   0xc   :  { %p631_p5 = scmp.ne.s32.totalorder %s14_s20, %s630_s23  ;;  %p635_p6 = scmp.lt.s32.totalorder %s14_s20, %s14_s20 }
   0xd   :  { %p636_p7 = scmp.lt.s32.totalorder %s630_s23, %s630_s23 }
   0xf   :  { %p637_p8 = por %p636_p7, %p635_p6 }
  0x11   :  { %p638_p9 = pnand %p637_p8, %p631_p5 }
  0x13   :  { %641 = shalt.err (!%p638_p9)  }
  0x14   :  { %s689_s0 = smov [#allocation7]  }
  0x15   :  { %16 = dma.vmem_to_smem %s14_s20, 16, %s689_s0, [#allocation5] }
  0x16   :  { %672 = dma.done.wait [#allocation5], 32 }
  0x17   :  { %673 = vsyncadd [#allocation5], 4294967264 }
  0x18   :  { %18 = sfence }
  0x19   :  { %19 = vsyncpa [#allocation9], 0  ;;  %s680_s1 = smov 0  }
  0x1a LB: > { %s28_s24 = sld [smem:[#allocation6 + %s682_s1]]  ;;  %s31_s29 = scalar_lea.vmem [#allocation2], %s682_s1  ;;  %s682_s1 = sphi %s680_s1, %s26_s1  }
  0x1b   : > { %s29_s25 = sld [smem:[#allocation7 + %s682_s1]] }
  0x20   : > { %s30_s28 = scalar_lea.vmem %s798_s2, %s28_s24 }
  0x21   : > { %v49_v0 = vld [vmem:[%s30_s28] sm:$0x1] }
  0x22   : > { %50 = vst [vmem:[%s31_s29] sm:$0x1] %v49_v0 }
  0x23   : > { %75 = vsyncadd [#allocation4], 16  ;;  %s76_s6 = scalar_lea.vmem %s799_s3, %s29_s25  ;;  %s77_s7 = scalar_lea.vmem [#allocation3], %s682_s1 }
  0x24   : > { %v96_v1 = vld [vmem:[%s76_s6] sm:$0x1] }
  0x25   : > { %97 = vst [vmem:[%s77_s7] sm:$0x1] %v96_v1 }
  0x26   : > { %122 = vsyncadd [#allocation4 + $0x1], 16  ;;  %s26_s1 = sadd.s32 1, %s682_s1  }
  0x27   : > { %p23_p10 = scmp.ge.s32.totalorder %s26_s1, 128  }
  0x28   :  { %s684_s8 = smov (%p23_p10), 0  }
  0x29   :  { %25 = sbr.rel (!%p23_p10) target bundleno = 26 (0x1a), region = 121 }
  0x30 LB: > { %674 = dma.done.wait [#allocation4], 16  ;;  %s686_s8 = sphi %s684_s8, %s128_s8  }
  0x31   : > { %675 = vsyncadd [#allocation4], 4294967280 }
  0x32   : > { %676 = dma.done.wait [#allocation4 + $0x1], 16 }
  0x33   : > { %677 = vsyncadd [#allocation4 + $0x1], 4294967280  ;;  %s128_s8 = sadd.s32 1, %s686_s8  }
  0x34   : > { %p125_p11 = scmp.ge.s32.totalorder %s128_s8, 128  }
  0x35   :  { %v134_v2 = vld [vmem:[#allocation2] sm:$0xff] (%p125_p11)  ;;  %vm182_vm0 = vcmask (%p125_p11), 261120   ;;  %v136_v4 = vld [vmem:[#allocation2 + $0x10] sm:$0xff] (%p125_p11)  ;;  %v135_v7 = vld [vmem:[#allocation2 + $0x8] sm:$0xff] (%p125_p11)  ;;  %vm354_vm1 = vcmask (%p125_p11), 130112   ;;  %vm361_vm2 = vcmask (%p125_p11), 195712  }
  0x36   :  { %127 = sbr.rel (!%p125_p11) target bundleno = 48 (0x30), region = 132  ;;  %v150_v3 = vld [vmem:[#allocation3] sm:$0xff] (%p125_p11)  ;;  %v152_v6 = vld [vmem:[#allocation3 + $0x10] sm:$0xff] (%p125_p11)  ;;  %v151_v8 = vld [vmem:[#allocation3 + $0x8] sm:$0xff] (%p125_p11)  ;;  %vm368_vm3 = vcmask (%p125_p11), 261312   ;;  %vm375_vm4 = vcmask (%p125_p11), 326912  }
  0x37   :  { %v166_v5 = vmul.f32 (%p125_p11), %v150_v3, %v134_v2  ;;  %v168_v9 = vmul.f32 (%p125_p11), %v152_v6, %v136_v4  ;;  %v167_v10 = vmul.f32 (%p125_p11), %v151_v8, %v135_v7  ;;  %v137_v11 = vld [vmem:[#allocation2 + $0x18] sm:$0xff] (%p125_p11)  ;;  %v138_v13 = vld [vmem:[#allocation2 + $0x20] sm:$0xff] (%p125_p11)  ;;  %v139_v17 = vld [vmem:[#allocation2 + $0x28] sm:$0xff] (%p125_p11)  ;;  %vm382_vm5 = vcmask (%p125_p11), 392512   ;;  %s690_s2 = smov (%p125_p11), [#allocation8]  }
  0x38   :  { %v153_v12 = vld [vmem:[#allocation3 + $0x18] sm:$0xff] (%p125_p11)  ;;  %v154_v16 = vld [vmem:[#allocation3 + $0x20] sm:$0xff] (%p125_p11)  ;;  %v155_v18 = vld [vmem:[#allocation3 + $0x28] sm:$0xff] (%p125_p11)  ;;  %vm389_vm6 = vcmask (%p125_p11), 458112   ;;  %vm396_vm7 = vcmask (%p125_p11), 523712   ;;  %vm403_vm8 = vcmask (%p125_p11), 589312  }
  0x39   :  { %v183_v14 = vsel (%p125_p11), %vm182_vm0, %v166_v5, 0.0  ;;  %v169_v15 = vmul.f32 (%p125_p11), %v153_v12, %v137_v11  ;;  %v189_v19 = vsel (%p125_p11), %vm182_vm0, %v168_v9, 0.0  ;;  %v186_v20 = vsel (%p125_p11), %vm182_vm0, %v167_v10, 0.0  ;;  %v140_v24 = vld [vmem:[#allocation2 + $0x30] sm:$0xff] (%p125_p11)  ;;  %v141_v26 = vld [vmem:[#allocation2 + $0x38] sm:$0xff] (%p125_p11)  ;;  %v142_v32 = vld [vmem:[#allocation2 + $0x40] sm:$0xff] (%p125_p11) }
  0x3a   :  { %184 = vadd.xlane.f32.xlu0 (%p125_p11), %v183_v14  ;;  %190 = vadd.xlane.f32.xlu1 (%p125_p11), %v189_v19  ;;  %v170_v21 = vmul.f32 (%p125_p11), %v154_v16, %v138_v13  ;;  %v171_v23 = vmul.f32 (%p125_p11), %v155_v18, %v139_v17  ;;  %v156_v25 = vld [vmem:[#allocation3 + $0x30] sm:$0xff] (%p125_p11)  ;;  %v157_v27 = vld [vmem:[#allocation3 + $0x38] sm:$0xff] (%p125_p11)  ;;  %v158_v33 = vld [vmem:[#allocation3 + $0x40] sm:$0xff] (%p125_p11)  ;;  %vm410_vm9 = vcmask (%p125_p11), 654912   ;;  %vm417_vm10 = vcmask (%p125_p11), 720512   ;;  %s462_s3 = sshll.u32 (%p125_p11), %s690_s2, 4  ;;  %s463_s3 = int_to_ptr.vmem [resolvable:$true] %s462_s3 }
  0x3b   :  { %v192_v22 = vsel (%p125_p11), %vm182_vm0, %v169_v15, 0.0  ;;  %v172_v29 = vmul.f32 (%p125_p11), %v156_v25, %v140_v24  ;;  %v173_v31 = vmul.f32 (%p125_p11), %v157_v27, %v141_v26  ;;  %v143_v34 = vld [vmem:[#allocation2 + $0x48] sm:$0xff] (%p125_p11)  ;;  %v174_v37 = vmul.f32 (%p125_p11), %v158_v33, %v142_v32  ;;  %v144_v40 = vld [vmem:[#allocation2 + $0x50] sm:$0xff] (%p125_p11)  ;;  %v145_v42 = vld [vmem:[#allocation2 + $0x58] sm:$0xff] (%p125_p11)  ;;  %s642_s9 = scalar_lea.vmem (%p125_p11), %s463_s3, 16  ;;  %s646_s10 = scalar_lea.vmem (%p125_p11), %s463_s3, 32 }
  0x3c   :  { %v195_v28 = vsel (%p125_p11), %vm182_vm0, %v170_v21, 0.0  ;;  %v198_v30 = vsel (%p125_p11), %vm182_vm0, %v171_v23, 0.0  ;;  %v159_v35 = vld [vmem:[#allocation3 + $0x48] sm:$0xff] (%p125_p11)  ;;  %v160_v41 = vld [vmem:[#allocation3 + $0x50] sm:$0xff] (%p125_p11)  ;;  %v161_v43 = vld [vmem:[#allocation3 + $0x58] sm:$0xff] (%p125_p11)  ;;  %v343_v21 = vlaneseq (%p125_p11)  ;;  %vm424_vm11 = vcmask (%p125_p11), 786112   ;;  %p643_p12 = scmp.ne.s32.totalorder (%p125_p11), %s463_s3, %s642_s9  ;;  %p647_p13 = scmp.lt.s32.totalorder (%p125_p11), %s463_s3, %s463_s3 }
  0x3d   :  { %v201_v36 = vsel %vm182_vm0, %v172_v29, 0.0  ;;  %v204_v38 = vsel %vm182_vm0, %v173_v31, 0.0  ;;  %v175_v39 = vmul.f32 %v159_v35, %v143_v34  ;;  %v207_v44 = vsel %vm182_vm0, %v174_v37, 0.0  ;;  %v146_v48 = vld [vmem:[#allocation2 + $0x60] sm:$0xff]  ;;  %v147_v50 = vld [vmem:[#allocation2 + $0x68] sm:$0xff]  ;;  %v148_v56 = vld [vmem:[#allocation2 + $0x70] sm:$0xff]  ;;  %p648_p0 = scmp.lt.s32.totalorder %s646_s10, %s642_s9 }
  0x3e   :  { %187 = vadd.xlane.f32.xlu0 %v186_v20  ;;  %193 = vadd.xlane.f32.xlu1 %v192_v22  ;;  %v176_v45 = vmul.f32 %v160_v41, %v144_v40  ;;  %v177_v47 = vmul.f32 %v161_v43, %v145_v42  ;;  %v162_v49 = vld [vmem:[#allocation3 + $0x60] sm:$0xff]  ;;  %v163_v51 = vld [vmem:[#allocation3 + $0x68] sm:$0xff]  ;;  %v164_v57 = vld [vmem:[#allocation3 + $0x70] sm:$0xff]  ;;  %v746_v37 = vshrl.u32 %v343_v21, 7  ;;  %vm431_vm12 = vcmask 851712  }
  0x3f   :  { %v210_v46 = vsel %vm182_vm0, %v175_v39, 0.0  ;;  %v178_v53 = vmul.f32 %v162_v49, %v146_v48  ;;  %v179_v55 = vmul.f32 %v163_v51, %v147_v50  ;;  %v149_v58 = vld [vmem:[#allocation2 + $0x78] sm:$0xff]  ;;  %v180_v61 = vmul.f32 %v164_v57, %v148_v56  ;;  %p649_p1 = por %p648_p0, %p647_p13 }
  0x40   :  { %v213_v52 = vsel %vm182_vm0, %v176_v45, 0.0  ;;  %v216_v54 = vsel %vm182_vm0, %v177_v47, 0.0  ;;  %v165_v59 = vld [vmem:[#allocation3 + $0x78] sm:$0xff]  ;;  %vm438_vm13 = vcmask 917312   ;;  %vm445_vm14 = vcmask 982912  }
  0x41   :  { %v219_v60 = vsel %vm182_vm0, %v178_v53, 0.0  ;;  %v222_v62 = vsel %vm182_vm0, %v179_v55, 0.0  ;;  %v181_v63 = vmul.f32 %v165_v59, %v149_v58  ;;  %v225_v0 = vsel %vm182_vm0, %v180_v61, 0.0  ;;  %p650_p2 = pnand %p649_p1, %p643_p12 }
  0x42   :  { %196 = vadd.xlane.f32.xlu0 %v195_v28  ;;  %199 = vadd.xlane.f32.xlu1 %v198_v30  ;;  %v744_v30 = vand.u32 127, %v343_v21  ;;  %vm452_vm15 = vcmask 1048512  }
  0x43   :  { %v228_v1 = vsel %vm182_vm0, %v181_v63, 0.0 }
  0x44   :  { %v356_v40 = vadd.s32 4294967280, %v744_v30  ;;  %v349_v41 = vadd.s32 4294967288, %v744_v30  ;;  %v363_v43 = vadd.s32 4294967272, %v744_v30  ;;  %v370_v49 = vadd.s32 4294967264, %v744_v30 }
  0x45   :  { %v347_v53 = vsub.s32 %v744_v30, %v746_v37  ;;  %v377_v58 = vadd.s32 4294967256, %v744_v30 }
  0x46   :  { %202 = vadd.xlane.f32.xlu0 %v201_v36  ;;  %205 = vadd.xlane.f32.xlu1 %v204_v38  ;;  %v352_v55 = vsub.s32 %v349_v41, %v746_v37  ;;  %v366_v57 = vsub.s32 %v363_v43, %v746_v37  ;;  %v419_v41 = vadd.s32 4294967208, %v744_v30 }
  0x4a   :  { %208 = vadd.xlane.f32.xlu0 %v207_v44  ;;  %211 = vadd.xlane.f32.xlu1 %v210_v46 }
  0x4e   :  { %214 = vadd.xlane.f32.xlu0 %v213_v52  ;;  %217 = vadd.xlane.f32.xlu1 %v216_v54  ;;  %v359_v54 = vsub.s32 %v356_v40, %v746_v37 }
  0x52   :  { %220 = vadd.xlane.f32.xlu0 %v219_v60  ;;  %223 = vadd.xlane.f32.xlu1 %v222_v62 }
  0x56   :  { %226 = vadd.xlane.f32.xlu0 %v225_v0  ;;  %229 = vadd.xlane.f32.xlu1 %v228_v1  ;;  %v373_v1 = vsub.s32 %v370_v49, %v746_v37 }
  0xc7   :  { %v185_v2 = vpop.xlane.xlu0 %184  ;;  %v191_v4 = vpop.xlane.xlu1 %190 }
  0xc8   :  { %v517_v3 = vmul.f32 -1.442695, %v185_v2  ;;  %v519_v5 = vmul.f32 -1.442695, %v191_v4 }
  0xca   :  { %554 = vpow2.f32 %v517_v3 }
  0xcb   :  { %556 = vpow2.f32 %v519_v5  ;;  %v188_v6 = vpop.xlane.xlu0 %187  ;;  %v194_v8 = vpop.xlane.xlu1 %193 }
  0xcc   :  { %v518_v7 = vmul.f32 -1.442695, %v188_v6  ;;  %v520_v9 = vmul.f32 -1.442695, %v194_v8 }
  0xce   :  { %558 = vpow2.f32 %v518_v7  ;;  %v384_v7 = vadd.s32 4294967248, %v744_v30 }
  0xcf   :  { %560 = vpow2.f32 %v520_v9  ;;  %v197_v10 = vpop.xlane.xlu0 %196  ;;  %v200_v12 = vpop.xlane.xlu1 %199 }
  0xd0   :  { %v521_v11 = vmul.f32 -1.442695, %v197_v10  ;;  %v522_v13 = vmul.f32 -1.442695, %v200_v12 }
  0xd2   :  { %562 = vpow2.f32 %v521_v11  ;;  %v380_v11 = vsub.s32 %v377_v58, %v746_v37 }
  0xd3   :  { %564 = vpow2.f32 %v522_v13  ;;  %v203_v14 = vpop.xlane.xlu0 %202  ;;  %v206_v17 = vpop.xlane.xlu1 %205 }
  0xd4   :  { %v555_v15 = vpop.eup %554  ;;  %v523_v16 = vmul.f32 -1.442695, %v203_v14  ;;  %v524_v20 = vmul.f32 -1.442695, %v206_v17  ;;  %v391_v14 = vadd.s32 4294967240, %v744_v30 }
  0xd5   :  { %v557_v18 = vpop.eup %556  ;;  %v279_v19 = vadd.f32 1.0, %v555_v15 }
  0xd6   :  { %v281_v22 = vadd.f32 1.0, %v557_v18  ;;  %566 = vpow2.f32 %v523_v16  ;;  %v398_v18 = vadd.s32 4294967232, %v744_v30 }
  0xd7   :  { %568 = vrcp.f32 %v279_v19  ;;  %v209_v23 = vpop.xlane.xlu0 %208  ;;  %v212_v26 = vpop.xlane.xlu1 %211 }
  0xd8   :  { %v559_v24 = vpop.eup %558  ;;  %570 = vrcp.f32 %v281_v22  ;;  %v525_v25 = vmul.f32 -1.442695, %v209_v23  ;;  %v526_v29 = vmul.f32 -1.442695, %v212_v26  ;;  %v387_v22 = vsub.s32 %v384_v7, %v746_v37 }
  0xd9   :  { %v561_v27 = vpop.eup %560  ;;  %v280_v28 = vadd.f32 1.0, %v559_v24  ;;  %572 = vpow2.f32 %v524_v20  ;;  %v394_v26 = vsub.s32 %v391_v14, %v746_v37 }
  0xda   :  { %v282_v31 = vadd.f32 1.0, %v561_v27  ;;  %574 = vpow2.f32 %v525_v25 }
  0xdb   :  { %576 = vrcp.f32 %v280_v28  ;;  %v215_v32 = vpop.xlane.xlu0 %214  ;;  %v218_v35 = vpop.xlane.xlu1 %217 }
  0xdc   :  { %v563_v33 = vpop.eup %562  ;;  %578 = vrcp.f32 %v282_v31  ;;  %v527_v34 = vmul.f32 -1.442695, %v215_v32  ;;  %v528_v39 = vmul.f32 -1.442695, %v218_v35  ;;  %v401_v31 = vsub.s32 %v398_v18, %v746_v37 }
  0xdd   :  { %v565_v36 = vpop.eup %564  ;;  %v283_v38 = vadd.f32 1.0, %v563_v33  ;;  %580 = vpow2.f32 %v526_v29  ;;  %v405_v32 = vadd.s32 4294967224, %v744_v30 }
  0xde   :  { %v284_v42 = vadd.f32 1.0, %v565_v36  ;;  %582 = vpow2.f32 %v527_v34 }
  0xdf   :  { %584 = vrcp.f32 %v283_v38  ;;  %v221_v44 = vpop.xlane.xlu0 %220  ;;  %v224_v47 = vpop.xlane.xlu1 %223  ;;  %v412_v38 = vadd.s32 4294967216, %v744_v30 }
  0xe0   :  { %v567_v45 = vpop.eup %566  ;;  %586 = vrcp.f32 %v284_v42  ;;  %v529_v46 = vmul.f32 -1.442695, %v221_v44  ;;  %v530_v51 = vmul.f32 -1.442695, %v224_v47 }
  0xe1   :  { %v569_v48 = vpop.eup %568  ;;  %v285_v50 = vadd.f32 1.0, %v567_v45  ;;  %588 = vpow2.f32 %v528_v39  ;;  %v408_v45 = vsub.s32 %v405_v32, %v746_v37  ;;  %v415_v49 = vsub.s32 %v412_v38, %v746_v37 }
  0xe2   :  { %v571_v52 = vpop.eup %570  ;;  %590 = vpow2.f32 %v529_v46  ;;  %v348_v5 = vrot.slane %v569_v48, %v347_v53 }
  0xe3   :  { %v573_v56 = vpop.eup %572  ;;  %592 = vrcp.f32 %v285_v50  ;;  %v227_v59 = vpop.xlane.xlu0 %226  ;;  %v360_v9 = vrot.slane %v571_v52, %v359_v54  ;;  %v426_v50 = vadd.s32 4294967200, %v744_v30 }
  0xe4   :  { %v575_v60 = vpop.eup %574  ;;  %v286_v61 = vadd.f32 1.0, %v573_v56  ;;  %594 = vpow2.f32 %v530_v51  ;;  %v531_v62 = vmul.f32 -1.442695, %v227_v59  ;;  %v230_v63 = vpop.xlane.xlu1 %229  ;;  %v433_v59 = vadd.s32 4294967192, %v744_v30 }
  0xe5   :  { %v577_v0 = vpop.eup %576  ;;  %v287_v2 = vadd.f32 1.0, %v575_v60  ;;  %v532_v3 = vmul.f32 -1.442695, %v230_v63 }
  0xe6   :  { %v579_v4 = vpop.eup %578  ;;  %v353_v6 = vrot.slane %v577_v0, %v352_v55  ;;  %596 = vrcp.f32 %v286_v61  ;;  %v422_v55 = vsub.s32 %v419_v41, %v746_v37  ;;  %v440_v0 = vadd.s32 4294967184, %v744_v30 }
  0xe7   :  { %v581_v8 = vpop.eup %580  ;;  %v367_v10 = vrot.slane %v579_v4, %v366_v57  ;;  %598 = vrcp.f32 %v287_v2  ;;  %v436_v4 = vsub.s32 %v433_v59, %v746_v37 }
  0xe8   :  { %v583_v12 = vpop.eup %582  ;;  %v355_v13 = vsel %vm354_vm1, %v353_v6, %v348_v5  ;;  %v288_v15 = vadd.f32 1.0, %v581_v8  ;;  %600 = vpow2.f32 %v531_v62  ;;  %v429_v62 = vsub.s32 %v426_v50, %v746_v37 }
  0xe9   :  { %v585_v16 = vpop.eup %584  ;;  %v362_v17 = vsel %vm361_vm2, %v360_v9, %v355_v13  ;;  %v289_v19 = vadd.f32 1.0, %v583_v12  ;;  %602 = vpow2.f32 %v532_v3  ;;  %v447_v5 = vadd.s32 4294967176, %v744_v30 }
  0xea   :  { %v587_v20 = vpop.eup %586  ;;  %v374_v21 = vrot.slane %v585_v16, %v373_v1  ;;  %604 = vrcp.f32 %v288_v15  ;;  %v369_v24 = vsel %vm368_vm3, %v367_v10, %v362_v17  ;;  %v443_v9 = vsub.s32 %v440_v0, %v746_v37 }
  0xeb   :  { %v589_v23 = vpop.eup %588  ;;  %606 = vrcp.f32 %v289_v19  ;;  %v381_v29 = vrot.slane %v587_v20, %v380_v11  ;;  %v450_v12 = vsub.s32 %v447_v5, %v746_v37 }
  0xec   :  { %v591_v25 = vpop.eup %590  ;;  %v290_v27 = vadd.f32 1.0, %v589_v23  ;;  %v376_v35 = vsel %vm375_vm4, %v374_v21, %v369_v24 }
  0xed   :  { %v593_v28 = vpop.eup %592  ;;  %v291_v33 = vadd.f32 1.0, %v591_v25  ;;  %v383_v43 = vsel %vm382_vm5, %v381_v29, %v376_v35 }
  0xee   :  { %v595_v34 = vpop.eup %594  ;;  %v388_v36 = vrot.slane %v593_v28, %v387_v22  ;;  %608 = vrcp.f32 %v290_v27 }
  0xef   :  { %610 = vrcp.f32 %v291_v33  ;;  %v292_v39 = vadd.f32 1.0, %v595_v34 }
  0xf0   :  { %v597_v40 = vpop.eup %596  ;;  %v390_v47 = vsel %vm389_vm6, %v388_v36, %v383_v43 }
  0xf1   :  { %v599_v42 = vpop.eup %598  ;;  %v395_v44 = vrot.slane %v597_v40, %v394_v26  ;;  %612 = vrcp.f32 %v292_v39 }
  0xf2   :  { %v601_v46 = vpop.eup %600  ;;  %v402_v48 = vrot.slane %v599_v42, %v401_v31 }
  0xf3   :  { %v603_v51 = vpop.eup %602  ;;  %v293_v52 = vadd.f32 1.0, %v601_v46  ;;  %v397_v58 = vsel %vm396_vm7, %v395_v44, %v390_v47 }
  0xf4   :  { %v605_v53 = vpop.eup %604  ;;  %v294_v54 = vadd.f32 1.0, %v603_v51  ;;  %v404_v61 = vsel %vm403_vm8, %v402_v48, %v397_v58 }
  0xf5   :  { %v607_v56 = vpop.eup %606  ;;  %v409_v57 = vrot.slane %v605_v53, %v408_v45  ;;  %614 = vrcp.f32 %v293_v52 }
  0xf6   :  { %v416_v60 = vrot.slane %v607_v56, %v415_v49  ;;  %616 = vrcp.f32 %v294_v54 }
  0xf7   :  { %v411_v2 = vsel %vm410_vm9, %v409_v57, %v404_v61 }
  0xf8   :  { %v609_v63 = vpop.eup %608  ;;  %v418_v6 = vsel %vm417_vm10, %v416_v60, %v411_v2 }
  0xf9   :  { %v611_v1 = vpop.eup %610  ;;  %v423_v3 = vrot.slane %v609_v63, %v422_v55 }
  0xfa   :  { %v430_v7 = vrot.slane %v611_v1, %v429_v62 }
  0xfb   :  { %v613_v8 = vpop.eup %612  ;;  %v425_v10 = vsel %vm424_vm11, %v423_v3, %v418_v6 }
  0xfc   :  { %v437_v11 = vrot.slane %v613_v8, %v436_v4  ;;  %v432_v13 = vsel %vm431_vm12, %v430_v7, %v425_v10 }
  0xfe   :  { %v439_v30 = vsel %vm438_vm13, %v437_v11, %v432_v13 }
  0xff   :  { %v615_v14 = vpop.eup %614 }
 0x100   :  { %v617_v15 = vpop.eup %616  ;;  %v444_v16 = vrot.slane %v615_v14, %v443_v9 }
 0x101   :  { %v451_v17 = vrot.slane %v617_v15, %v450_v12 }
 0x102   :  { %v446_v18 = vsel %vm445_vm14, %v444_v16, %v439_v30 }
 0x103   :  { %v453_v19 = vsel %vm452_vm15, %v451_v17, %v446_v18 }
 0x104   :  { %455 = vst [vmem:[#allocation8] sm:$0x1] %v453_v19 }
 0x105   :  { %653 = shalt.err (!%p650_p2)
}
 0x106   :  { %s654_s13 = scalar_lea.hbm %s800_s4, 16 }
 0x107   :  { %p655_p3 = scmp.ne.s32.totalorder %s800_s4, %s654_s13  ;;  %p658_p4 = scmp.lt.u32.totalorder %s654_s13, %s800_s4 }
 0x109   :  { %p660_p5 = pnand %p658_p4, %p655_p3 }
 0x10b   :  { %663 = shalt.err (!%p660_p5)
}
 0x10c   :  { %465 = dma.vmem_to_hbm [thread:$0]  %s463_s3, 16, %s800_s4, [#allocation9]  }
 0x10d   :  { %678 = dma.done.wait [#allocation9], 16  }
 0x10e   :  { %679 = vsyncadd [#allocation9], 4294967280 }
 0x10f   :  { %469 = vsyncpa [#allocation9], 1 }
 0x110   :  { %470 = vsyncmov [#allocation4] }
 0x113   :  { %s471_s20 = vpop.sfrf %470 }
 0x114   :  { %p533_p6 = scmp.ne.s32.totalorder %s471_s20, 0 }
 0x116   :  { %475 = shalt.err (%p533_p6)  }
 0x117   :  { %477 = vsyncmov [#allocation4 + $0x1] }
 0x11a   :  { %s478_s21 = vpop.sfrf %477 }
 0x11b   :  { %p534_p7 = scmp.ne.s32.totalorder %s478_s21, 0 }
 0x11d   :  { %482 = shalt.err (%p534_p7)  }

</bundles_post_ra>
